<compile_context>
chip_gen: v5e
topology: v5e:2x2
jax: 0.10.0
libtpu: 0.0.40
codegen_flags: <defaults>
</compile_context>

<pallas_src>
import jax
import jax.numpy as jnp
from jax.experimental import pallas as pl
from jax.experimental.pallas import tpu as pltpu

_SUBLANE = 8
_MAX_TB = 2048  # max batch-tile rows; per-tile VMEM footprint stays << scoped limits


def _round_up(x, m):
    return ((x + m - 1) // m) * m


def _tile_batch(batch):
    """Balanced batch tiling: >=2 grid steps when possible (v7x 2-TC sharding),
    tiles capped at _MAX_TB, padding kept to <8 rows per tile."""
    num_tiles = max(2, pl.cdiv(batch, _MAX_TB))
    tb = _round_up(pl.cdiv(batch, num_tiles), _SUBLANE)
    tb = min(tb, _round_up(batch, _SUBLANE))  # never exceed one tile covering B
    b_pad = _round_up(batch, tb)
    return tb, b_pad


def _mlp_kernel(x_ref, w1_ref, b1_ref, w2_ref, b2_ref, w3_ref, b3_ref, o_ref):
    cdt = w1_ref.dtype  # bf16 matmul-operand dtype; MXU accumulates in f32
    x = x_ref[...].astype(cdt)

    # Layer 1: Linear + ReLU (bias/ReLU in bf16 to keep intermediates compact).
    h1 = jnp.dot(x, w1_ref[...], preferred_element_type=jnp.float32)
    h1 = jnp.maximum(h1.astype(cdt) + b1_ref[...], 0)

    # Layer 2: Linear + ReLU.
    h2 = jnp.dot(h1, w2_ref[...], preferred_element_type=jnp.float32)
    h2 = jnp.maximum(h2.astype(cdt) + b2_ref[...], 0)

    # Layer 3: Linear (no activation); f32 bias-add on the f32 accumulator.
    out = jnp.dot(h2, w3_ref[...], preferred_element_type=jnp.float32)
    o_ref[...] = (out + b3_ref[...]).astype(o_ref.dtype)


def prepare_params(w1, b1, w2, b2, w3, b3):
    """One-time parameter prep (call once, reuse): cast weights / hidden biases to
    bf16; final bias stays f32.  Weights are (in_features, out_features)."""
    c = jnp.bfloat16
    return (w1.astype(c), b1.astype(c),
            w2.astype(c), b2.astype(c),
            w3.astype(c), b3.astype(jnp.float32))


@jax.jit
def goal_generator_forward(noise, w1, b1, w2, b2, w3, b3):
    """Pallas forward for GoalGenerator.

    noise: (B, noise_dim) float32
    w1: (noise_dim, 128) bf16, b1: (1, 128) bf16
    w2: (128, 128) bf16,       b2: (1, 128) bf16
    w3: (128, g_dim) bf16,     b3: (1, g_dim) f32
    returns: (B, g_dim) float32
    """
    B, noise_dim = noise.shape
    hidden = w1.shape[1]
    g_dim = w3.shape[1]

    tb, b_pad = _tile_batch(B)
    grid = (b_pad // tb,)

    # Only pad the batch when B is not tile-aligned (no-op HBM pass otherwise).
    if b_pad != B:
        x = jnp.zeros((b_pad, noise_dim), noise.dtype).at[:B].set(noise)
    else:
        x = noise

    flops = 2 * b_pad * (noise_dim * hidden + hidden * hidden + hidden * g_dim)
    bytes_accessed = (
        x.size * 4                               # f32 activations in
        + (w1.size + w2.size + w3.size) * 2      # bf16 weights (VMEM-resident)
        + (b1.size + b2.size) * 2 + b3.size * 4  # biases
        + b_pad * g_dim * 4                      # f32 output (unpadded lanes)
    )

    out = pl.pallas_call(
        _mlp_kernel,
        out_shape=jax.ShapeDtypeStruct((b_pad, g_dim), jnp.float32),
        grid=grid,
        in_specs=[
            pl.BlockSpec((tb, noise_dim), lambda i: (i, 0)),     # activations: batch-tiled
            pl.BlockSpec((noise_dim, hidden), lambda i: (0, 0)),  # weights/biases: resident
            pl.BlockSpec((1, hidden), lambda i: (0, 0)),
            pl.BlockSpec((hidden, hidden), lambda i: (0, 0)),
            pl.BlockSpec((1, hidden), lambda i: (0, 0)),
            pl.BlockSpec((hidden, g_dim), lambda i: (0, 0)),
            pl.BlockSpec((1, g_dim), lambda i: (0, 0)),
        ],
        out_specs=pl.BlockSpec((tb, g_dim), lambda i: (i, 0)),
        compiler_params=pltpu.CompilerParams(
            dimension_semantics=("parallel",),
            vmem_limit_bytes=32 * 1024 * 1024,
        ),
        cost_estimate=pl.CostEstimate(
            flops=flops, transcendentals=0, bytes_accessed=bytes_accessed),
    )(x, w1, b1, w2, b2, w3, b3)

    if b_pad != B:
        out = out[:B]
    return out


def init_params(key, noise_dim, g_dim, hidden=128):
    """Deterministic init mimicking PyTorch nn.Linear default (uniform +/- 1/sqrt(fan_in)).

    Weights are stored (in_features, out_features), i.e. pre-transposed relative
    to torch's (out, in) convention, so the kernel computes x @ W + b."""
    keys = jax.random.split(key, 6)

    def linear(kw, kb, fan_in, fan_out):
        bound = 1.0 / jnp.sqrt(jnp.float32(fan_in))
        w = jax.random.uniform(kw, (fan_in, fan_out), jnp.float32, -bound, bound)
        b = jax.random.uniform(kb, (1, fan_out), jnp.float32, -bound, bound)
        return w, b

    w1, b1 = linear(keys[0], keys[1], noise_dim, hidden)
    w2, b2 = linear(keys[2], keys[3], hidden, hidden)
    w3, b3 = linear(keys[4], keys[5], hidden, g_dim)
    return w1, b1, w2, b2, w3, b3


def reference_forward_f32(noise, w1, b1, w2, b2, w3, b3):
    h1 = jnp.maximum(noise @ w1 + b1, 0.0)
    h2 = jnp.maximum(h1 @ w2 + b2, 0.0)
    return h2 @ w3 + b3


def reference_forward_bf16(noise, w1, b1, w2, b2, w3, b3):
    """Reference using the same bf16-operand / f32-accumulate recipe as the kernel."""
    c = jnp.bfloat16
    h1 = jnp.dot(noise.astype(c), w1.astype(c), preferred_element_type=jnp.float32)
    h1 = jnp.maximum(h1.astype(c) + b1.astype(c), 0)
    h2 = jnp.dot(h1, w2.astype(c), preferred_element_type=jnp.float32)
    h2 = jnp.maximum(h2.astype(c) + b2.astype(c), 0)
    out = jnp.dot(h2, w3.astype(c), preferred_element_type=jnp.float32)
    return out + b3


if __name__ == "__main__":
    key = jax.random.PRNGKey(0)
    k_in, k_params = jax.random.split(key)

    batch = 8
    noise_dim = 32
    g_dim = 32

    noise = jax.random.normal(k_in, (batch, noise_dim), jnp.float32)
    raw_params = init_params(k_params, noise_dim, g_dim)
    params = prepare_params(*raw_params)  # one-time cast, reused across calls

    out = goal_generator_forward(noise, *params)
    out = jax.block_until_ready(out)
    assert out.shape == (batch, g_dim)

    # Tight check against a reference using the same bf16-operand recipe.
    ref_bf16 = reference_forward_bf16(noise, *raw_params)
    assert bool(jnp.allclose(out, ref_bf16, atol=5e-3, rtol=5e-3))

    # Loose check against the full-f32 PyTorch-equivalent reference.
    ref_f32 = reference_forward_f32(noise, *raw_params)
    assert bool(jnp.allclose(out, ref_f32, atol=5e-2, rtol=5e-2))

    print("KERNEL_OK")
</pallas_src>

<mosaic_0001>
module attributes {stable_mosaic.version = 11 : i64} {
  func.func @_mlp_kernel(%arg0: i32, %arg1: memref<8x32xf32, #tpu.memory_space<vmem>>, %arg2: memref<32x128xbf16, #tpu.memory_space<vmem>>, %arg3: memref<1x128xbf16, #tpu.memory_space<vmem>>, %arg4: memref<128x128xbf16, #tpu.memory_space<vmem>>, %arg5: memref<1x128xbf16, #tpu.memory_space<vmem>>, %arg6: memref<128x32xbf16, #tpu.memory_space<vmem>>, %arg7: memref<1x32xf32, #tpu.memory_space<vmem>>, %arg8: memref<8x32xf32, #tpu.memory_space<vmem>>) attributes {dimension_semantics = [#tpu.dimension_semantics<parallel>], iteration_bounds = array<i64: 1>, scalar_prefetch = 0 : i64, scratch_operands = 0 : i64, tpu.core_type = #tpu.core_type<tc>, window_params = [{transform_indices = @transform_0, window_bounds = array<i64: 8, 32>}, {pipeline_mode = #tpu.pipeline_mode<synchronous>, transform_indices = @transform_1, window_bounds = array<i64: 32, 128>}, {pipeline_mode = #tpu.pipeline_mode<synchronous>, transform_indices = @transform_2, window_bounds = array<i64: 1, 128>}, {pipeline_mode = #tpu.pipeline_mode<synchronous>, transform_indices = @transform_3, window_bounds = array<i64: 128, 128>}, {pipeline_mode = #tpu.pipeline_mode<synchronous>, transform_indices = @transform_4, window_bounds = array<i64: 1, 128>}, {pipeline_mode = #tpu.pipeline_mode<synchronous>, transform_indices = @transform_5, window_bounds = array<i64: 128, 32>}, {pipeline_mode = #tpu.pipeline_mode<synchronous>, transform_indices = @transform_6, window_bounds = array<i64: 1, 32>}, {transform_indices = @transform_7, window_bounds = array<i64: 8, 32>}]} {
    %c0 = arith.constant 0 : index
    %c0_0 = arith.constant 0 : index
    %0 = vector.load %arg1[%c0, %c0_0] : memref<8x32xf32, #tpu.memory_space<vmem>>, vector<8x32xf32>
    %1 = arith.truncf %0 : vector<8x32xf32> to vector<8x32xbf16>
    %c0_1 = arith.constant 0 : index
    %c0_2 = arith.constant 0 : index
    %2 = vector.load %arg2[%c0_1, %c0_2] : memref<32x128xbf16, #tpu.memory_space<vmem>>, vector<32x128xbf16>
    %cst = arith.constant dense<0.000000e+00> : vector<8x128xf32>
    %3 = tpu.matmul %1, %2, %cst {dimension_numbers = #tpu.dot_dimension_numbers<[1], [0], [0], [1], [0, 0, 1, 1], [], []>} : vector<8x32xbf16>, vector<32x128xbf16>, vector<8x128xf32> -> vector<8x128xf32>
    %4 = arith.truncf %3 : vector<8x128xf32> to vector<8x128xbf16>
    %c0_3 = arith.constant 0 : index
    %c0_4 = arith.constant 0 : index
    %5 = vector.load %arg3[%c0_3, %c0_4] : memref<1x128xbf16, #tpu.memory_space<vmem>>, vector<1x128xbf16>
    %6 = vector.broadcast %5 : vector<1x128xbf16> to vector<8x128xbf16>
    %7 = arith.addf %4, %6 : vector<8x128xbf16>
    %cst_5 = arith.constant 0.000000e+00 : bf16
    %8 = vector.broadcast %cst_5 : bf16 to vector<8x128xbf16>
    %9 = arith.maximumf %7, %8 : vector<8x128xbf16>
    %c0_6 = arith.constant 0 : index
    %c0_7 = arith.constant 0 : index
    %10 = vector.load %arg4[%c0_6, %c0_7] : memref<128x128xbf16, #tpu.memory_space<vmem>>, vector<128x128xbf16>
    %cst_8 = arith.constant dense<0.000000e+00> : vector<8x128xf32>
    %11 = tpu.matmul %9, %10, %cst_8 {dimension_numbers = #tpu.dot_dimension_numbers<[1], [0], [0], [1], [0, 0, 1, 1], [], []>} : vector<8x128xbf16>, vector<128x128xbf16>, vector<8x128xf32> -> vector<8x128xf32>
    %12 = arith.truncf %11 : vector<8x128xf32> to vector<8x128xbf16>
    %c0_9 = arith.constant 0 : index
    %c0_10 = arith.constant 0 : index
    %13 = vector.load %arg5[%c0_9, %c0_10] : memref<1x128xbf16, #tpu.memory_space<vmem>>, vector<1x128xbf16>
    %14 = vector.broadcast %13 : vector<1x128xbf16> to vector<8x128xbf16>
    %15 = arith.addf %12, %14 : vector<8x128xbf16>
    %cst_11 = arith.constant 0.000000e+00 : bf16
    %16 = vector.broadcast %cst_11 : bf16 to vector<8x128xbf16>
    %17 = arith.maximumf %15, %16 : vector<8x128xbf16>
    %c0_12 = arith.constant 0 : index
    %c0_13 = arith.constant 0 : index
    %18 = vector.load %arg6[%c0_12, %c0_13] : memref<128x32xbf16, #tpu.memory_space<vmem>>, vector<128x32xbf16>
    %cst_14 = arith.constant dense<0.000000e+00> : vector<8x32xf32>
    %19 = tpu.matmul %17, %18, %cst_14 {dimension_numbers = #tpu.dot_dimension_numbers<[1], [0], [0], [1], [0, 0, 1, 1], [], []>} : vector<8x128xbf16>, vector<128x32xbf16>, vector<8x32xf32> -> vector<8x32xf32>
    %c0_15 = arith.constant 0 : index
    %c0_16 = arith.constant 0 : index
    %20 = vector.load %arg7[%c0_15, %c0_16] : memref<1x32xf32, #tpu.memory_space<vmem>>, vector<1x32xf32>
    %21 = vector.broadcast %20 : vector<1x32xf32> to vector<8x32xf32>
    %22 = arith.addf %19, %21 : vector<8x32xf32>
    %c0_17 = arith.constant 0 : index
    %c0_18 = arith.constant 0 : index
    %23 = vector.load %arg8[%c0_17, %c0_18] : memref<8x32xf32, #tpu.memory_space<vmem>>, vector<8x32xf32>
    tpu.vector_store %arg8[%c0_17, %c0_18], %22 {strides = array<i32>} : memref<8x32xf32, #tpu.memory_space<vmem>>, vector<8x32xf32>,
    return
  }
  func.func @transform_0(%arg0: i32) -> (i32, i32) {
    %c0_i32 = arith.constant 0 : i32
    %c0_i32_0 = arith.constant 0 : i32
    return %arg0, %c0_i32 : i32, i32
  }
  func.func @transform_1(%arg0: i32) -> (i32, i32) {
    %c0_i32 = arith.constant 0 : i32
    %c0_i32_0 = arith.constant 0 : i32
    %c0_i32_1 = arith.constant 0 : i32
    return %c0_i32, %c0_i32_0 : i32, i32
  }
  func.func @transform_2(%arg0: i32) -> (i32, i32) {
    %c0_i32 = arith.constant 0 : i32
    %c0_i32_0 = arith.constant 0 : i32
    %c0_i32_1 = arith.constant 0 : i32
    return %c0_i32, %c0_i32_0 : i32, i32
  }
  func.func @transform_3(%arg0: i32) -> (i32, i32) {
    %c0_i32 = arith.constant 0 : i32
    %c0_i32_0 = arith.constant 0 : i32
    %c0_i32_1 = arith.constant 0 : i32
    return %c0_i32, %c0_i32_0 : i32, i32
  }
  func.func @transform_4(%arg0: i32) -> (i32, i32) {
    %c0_i32 = arith.constant 0 : i32
    %c0_i32_0 = arith.constant 0 : i32
    %c0_i32_1 = arith.constant 0 : i32
    return %c0_i32, %c0_i32_0 : i32, i32
  }
  func.func @transform_5(%arg0: i32) -> (i32, i32) {
    %c0_i32 = arith.constant 0 : i32
    %c0_i32_0 = arith.constant 0 : i32
    %c0_i32_1 = arith.constant 0 : i32
    return %c0_i32, %c0_i32_0 : i32, i32
  }
  func.func @transform_6(%arg0: i32) -> (i32, i32) {
    %c0_i32 = arith.constant 0 : i32
    %c0_i32_0 = arith.constant 0 : i32
    %c0_i32_1 = arith.constant 0 : i32
    return %c0_i32, %c0_i32_0 : i32, i32
  }
  func.func @transform_7(%arg0: i32) -> (i32, i32) {
    %c0_i32 = arith.constant 0 : i32
    %c0_i32_0 = arith.constant 0 : i32
    return %arg0, %c0_i32 : i32, i32
  }
}

</mosaic_0001>

<bundles_post_ra>
// kernel: goal_generator_forward.1
= control target key start
LH: loop header
LB: loop body
LE: loop exit
PB: predicated region body
PF: predicated region fallthrough
CT: control target
= control target key end

     0   :  { %12 = vsyncpa [#allocation3], 0  ;;  %s538_s0 = inlined_call_operand.hbm [shape: f32[8,32], index: 0, kind: input, shape index: {}]   ;;  %s539_s1 = inlined_call_operand.vmem [shape: bf16[32,128], index: 1, kind: input, shape index: {}]   ;;  %s540_s2 = inlined_call_operand.vmem [shape: bf16[1,128], index: 2, kind: input, shape index: {}]   ;;  %s541_s3 = inlined_call_operand.vmem [shape: bf16[128,128], index: 3, kind: input, shape index: {}]   ;;  %s542_s4 = inlined_call_operand.vmem [shape: bf16[1,128], index: 4, kind: input, shape index: {}]   ;;  %s543_s5 = inlined_call_operand.vmem [shape: bf16[128,32], index: 5, kind: input, shape index: {}]   ;;  %s544_s6 = inlined_call_operand.vmem [shape: f32[1,32], index: 6, kind: input, shape index: {}]   ;;  %s545_s7 = inlined_call_operand.hbm [shape: f32[8,32], index: 7, kind: output, shape index: {}]  }
   0x1   :  { %13 = vsyncpa [#allocation4], 0  ;;  %s19_s26 = sshll.u32 %s538_s0, 4  ;;  %s425_s27 = smov [#allocation2]   ;;  %s20_s26 = int_to_ptr.hbm [resolvable:$true] %s19_s26 }
   0x2   :  { %s21_s28 = sshll.u32 %s425_s27, 4  ;;  %s22_s28 = int_to_ptr.vmem [resolvable:$true] %s21_s28 }
   0x3   :  { %24 = dma.hbm_to_vmem [thread:$0]  %s20_s26, 128, %s22_s28, [#allocation3]  }
   0x4   :  { %421 = dma.done.wait [#allocation3], 128  }
   0x5   :  { %422 = vsyncadd [#allocation3], 4294967168  ;;  %v353_v0 = vld [vmem:[%s539_s1 + $0x8] sm:$0xff]  ;;  %v361_v1 = vld [vmem:[%s541_s3 + $0x38] sm:$0xff]  ;;  %vm60_vm0 = vcmask 261120  }
   0x6   :  { %70 = vmatpush.bf16.msra.mxu0 %v353_v0  ;;  %v352_v2 = vld [vmem:[%s539_s1] sm:$0xff]  ;;  %154 = vmatpush.bf16.msra.mxu1 %v361_v1  ;;  %v360_v4 = vld [vmem:[%s541_s3 + $0x30] sm:$0xff]  ;;  %v359_v6 = vld [vmem:[%s541_s3 + $0x28] sm:$0xff] }
   0x7   :  { %v42_v3 = vld [vmem:[#allocation2] sm:$0xff]  ;;  %v357_v8 = vld [vmem:[%s541_s3 + $0x18] sm:$0xff]  ;;  %v356_v9 = vld [vmem:[%s541_s3 + $0x10] sm:$0xff] }
   0x8   :  { %v43_v5 = vpack.c.bf16 %v42_v3, %v42_v3  ;;  %v358_v7 = vld [vmem:[%s541_s3 + $0x20] sm:$0xff]  ;;  %v355_v10 = vld [vmem:[%s541_s3 + $0x8] sm:$0xff]  ;;  %v369_v12 = vld [vmem:[%s543_s5 + $0x38] sm:$0xff] }
   0x9   :  { %v354_v11 = vld [vmem:[%s541_s3] sm:$0xff]  ;;  %248 = vmatpush.bf16.msra.mxu2 %v369_v12  ;;  %v368_v13 = vld [vmem:[%s543_s5 + $0x30] sm:$0xff]  ;;  %v367_v14 = vld [vmem:[%s543_s5 + $0x28] sm:$0xff] }
   0xa   :  { %71 = vmatpush.bf16.msra.mxu0 %v352_v2  ;;  %155 = vmatpush.bf16.msra.mxu1 %v360_v4  ;;  %v366_v15 = vld [vmem:[%s543_s5 + $0x20] sm:$0xff]  ;;  %v365_v18 = vld [vmem:[%s543_s5 + $0x18] sm:$0xff]  ;;  %v364_v28 = vld [vmem:[%s543_s5 + $0x10] sm:$0xff] }
   0xb   :  { %v78_v16 = vld [vmem:[%s540_s2] sm:$0x1]  ;;  %v363_v29 = vld [vmem:[%s543_s5 + $0x8] sm:$0xff] }
   0xc   :  { %v80_v17 = vpack.i.b16 %v78_v16, %v78_v16  ;;  %v362_v30 = vld [vmem:[%s543_s5] sm:$0xff]  ;;  %s426_s5 = smov [#allocation5]  }
   0xd   :  { %287 = vmatmul.msk.bf16.vlgmr.msra.gmra.mxu0 %vm60_vm0, %v43_v5  ;;  %249 = vmatpush.bf16.msra.mxu2 %v368_v13  ;;  %v168_v31 = vld [vmem:[%s542_s4] sm:$0x1]  ;;  %s267_s19 = sshll.u32 %s426_s5, 4  ;;  %s269_s4 = sshll.u32 %s545_s7, 4  ;;  %s268_s19 = int_to_ptr.vmem [resolvable:$true] %s267_s19  ;;  %s270_s4 = int_to_ptr.hbm [resolvable:$true] %s269_s4 }
   0xe   :  { %156 = vmatpush.bf16.msra.mxu1 %v359_v6  ;;  %v82_v19 = vperm.slane %v80_v17, 0  ;;  %v170_v32 = vpack.i.b16 %v168_v31, %v168_v31  ;;  %v372_v42 = vld [vmem:[%s544_s6] ss:$0 sm:$0xff] }
  0x10   :  { %v84_v22 = vunpack.c.l.bf16 %v82_v19  ;;  %v172_v33 = vperm.slane %v170_v32, 0 }
  0x11   :  { %250 = vmatpush.bf16.msra.mxu2 %v367_v14 }
  0x12   :  { %157 = vmatpush.bf16.msra.mxu1 %v358_v7  ;;  %v174_v36 = vunpack.c.l.bf16 %v172_v33 }
  0x15   :  { %251 = vmatpush.bf16.msra.mxu2 %v366_v15 }
  0x16   :  { %158 = vmatpush.bf16.msra.mxu1 %v357_v8 }
  0x19   :  { %252 = vmatpush.bf16.msra.mxu2 %v365_v18 }
  0x1a   :  { %159 = vmatpush.bf16.msra.mxu1 %v356_v9 }
  0x1d   :  { %253 = vmatpush.bf16.msra.mxu2 %v364_v28 }
  0x1e   :  { %160 = vmatpush.bf16.msra.mxu1 %v355_v10 }
  0x21   :  { %254 = vmatpush.bf16.msra.mxu2 %v363_v29 }
  0x22   :  { %161 = vmatpush.bf16.msra.mxu1 %v354_v11 }
  0x25   :  { %255 = vmatpush.bf16.msra.mxu2 %v362_v30 }
  0x8a   :  { %v73_v20 = vpop.f32.mrf.mxu0 }
  0x8b   :  { %v77_v21 = vpack.c.bf16 %v73_v20, %v73_v20 }
  0x8d   :  { %v83_v23 = vunpack.c.l.bf16 %v77_v21 }
  0x8f   :  { %v85_v24 = vadd.f32 %v84_v22, %v83_v23 }
  0x91   :  { %v88_v25 = vmax.f32 %v85_v24, 0.0 }
  0x92   :  { %v75_v26 = vpop.f32.mrf.mxu0 }
  0x93   :  { %v89_v27 = vpack.c.bf16 %v88_v25, %v88_v25 }
  0x95   :  { %162 = vmatmul.bf16.vlgmr.msra.gmra.mxu1 %v89_v27 }
 0x112   :  { %v163_v34 = vpop.f32.mrf.mxu1 }
 0x113   :  { %v167_v35 = vpack.c.bf16 %v163_v34, %v163_v34 }
 0x115   :  { %v173_v37 = vunpack.c.l.bf16 %v167_v35 }
 0x117   :  { %v175_v38 = vadd.f32 %v174_v36, %v173_v37 }
 0x119   :  { %v178_v39 = vmax.f32 %v175_v38, 0.0 }
 0x11a   :  { %v165_v40 = vpop.f32.mrf.mxu1 }
 0x11b   :  { %v179_v41 = vpack.c.bf16 %v178_v39, %v178_v39 }
 0x11d   :  { %256 = vmatmul.bf16.vlgmr.msra.gmra.mxu2 %v179_v41 }
 0x1a0   :  { %v257_v43 = vpop.f32.mrf.mxu2 }
 0x1a1   :  { %v258_v44 = vadd.f32 %v372_v42, %v257_v43 }
 0x1a3   :  { %261 = vst.msk [vmem:[#allocation5] sm:$0xff] %vm60_vm0, %v258_v44 }
 0x1a4   :  { %272 = dma.vmem_to_hbm [thread:$0]  %s268_s19, 128, %s270_s4, [#allocation4]  }
 0x1a8   :  { %v259_v45 = vpop.f32.mrf.mxu2 }
 0x1a9   :  { %423 = dma.done.wait [#allocation4], 128  }
 0x1aa   :  { %424 = vsyncadd [#allocation4], 4294967168 }
 0x1ab   :  { %277 = vsyncpa [#allocation3], 1 }
 0x1ac   :  { %278 = vsyncpa [#allocation4], 1 }

</bundles_post_ra>
